<compile_context>
chip_gen: v5e
topology: v5e:2x2
jax: 0.10.0
libtpu: 0.0.40
codegen_flags: <defaults>
</compile_context>

<pallas_src>
import functools

import jax
import jax.numpy as jnp
from jax import lax
from jax.experimental import pallas as pl
from jax.experimental.pallas import tpu as pltpu


# ------------------------------- fused kernel ------------------------------- #

def _mha_fused_kernel(xq_ref, xk_ref, xv_ref, wqkv_ref, bqkv_ref,
                      wm_ref, bm_ref, mask_ref, out_ref, smean_ref,
                      *, num_heads, dim):
    d_model = num_heads * dim
    lq = xq_ref.shape[1]            # query length N
    lk = xk_ref.shape[1]            # key/value length M

    # (C, L) -> (L, C): lane-dense activations for all following matmuls.
    xq = xq_ref[...].T              # (N, d_model)
    xk = xk_ref[...].T              # (M, d_model)
    xv = xv_ref[...].T              # (M, d_model)

    # Fused QKV projection: one MXU matmul over the stacked streams.
    # Rows: [query | key | value]; cols: [Wq | Wk | Wv], each head-major.
    x_all = jnp.concatenate([xq, xk, xv], axis=0)                 # (N + 2M, d_model)
    qkv = jnp.dot(x_all, wqkv_ref[...],
                  preferred_element_type=jnp.float32) + bqkv_ref[...]

    scale = 1.0 / jnp.sqrt(jnp.float32(dim))
    inv_mask = 1.0 - mask_ref[...]                                # 1.0 where masked out

    # --- per-head scores (num_heads is small & static; loop unrolls at trace time)
    scores, v_heads = [], []
    for h in range(num_heads):
        c0 = h * dim
        q_h = qkv[0:lq, c0:c0 + dim]                              # (N, dim)
        k_h = qkv[lq:lq + lk, d_model + c0:d_model + c0 + dim]    # (M, dim)
        v_h = qkv[lq + lk:lq + 2 * lk,
                  2 * d_model + c0:2 * d_model + c0 + dim]        # (M, dim)
        s_h = lax.dot_general(q_h, k_h, (((1,), (1,)), ((), ())),
                              preferred_element_type=jnp.float32) * scale
        scores.append(s_h)
        v_heads.append(v_h)

    # PyTorch semantics: mask bias uses the global min over ALL heads, minus 20.
    gmin = jnp.min(scores[0])
    for s_h in scores[1:]:
        gmin = jnp.minimum(gmin, jnp.min(s_h))
    bias = (gmin - 20.0) * inv_mask                               # (N, M)

    wm = wm_ref[...]                                              # (d_model, d_model), head-major rows
    smean = jnp.zeros((lq, lk), jnp.float32)
    out_acc = jnp.zeros((lq, d_model), jnp.float32)
    for h in range(num_heads):
        s_h = scores[h] + bias
        smean = smean + s_h
        # softmax over keys; divide via EUP reciprocal (+1 Newton step for accuracy).
        m_h = jnp.max(s_h, axis=-1, keepdims=True)
        e_h = jnp.exp(s_h - m_h)
        denom = jnp.sum(e_h, axis=-1, keepdims=True)
        r = pl.reciprocal(denom, approx=True)
        r = r * (2.0 - denom * r)
        p_h = e_h * r                                             # (N, M)
        o_h = jnp.dot(p_h, v_heads[h],
                      preferred_element_type=jnp.float32)         # (N, dim)
        out_acc = out_acc + jnp.dot(o_h, wm[h * dim:(h + 1) * dim, :],
                                    preferred_element_type=jnp.float32)

    out_ref[...] = out_acc + bm_ref[...]                          # (N, d_model) lane-dense store
    smean_ref[...] = smean * (1.0 / num_heads)


# ---------------------------- params & wrapper ------------------------------ #

def prepare_params(raw, num_heads):
    """One-time weight reshuffle: head-major output channels + QKV concat."""
    d_model = raw["w_q"].shape[0]
    dim = d_model // num_heads
    # PyTorch .view(1, dim, H, L): output channel c = d*H + h.  Make head h's
    # channels contiguous: new column j = h*dim + d  <-  old column c = d*H + h.
    perm = jnp.arange(d_model).reshape(dim, num_heads).T.reshape(-1)
    w_qkv = jnp.concatenate([raw["w_q"][:, perm], raw["w_k"][:, perm],
                             raw["w_v"][:, perm]], axis=1)        # (d_model, 3*d_model)
    b_qkv = jnp.concatenate([raw["b_q"][:, perm], raw["b_k"][:, perm],
                             raw["b_v"][:, perm]], axis=1)        # (1, 3*d_model)
    w_merge_p = raw["w_merge"][perm, :]                           # head-major input rows
    return {"w_qkv": w_qkv, "b_qkv": b_qkv,
            "w_merge_p": w_merge_p, "b_merge": raw["b_merge"]}


def multi_headed_attention(params, query, key, value, dist, mask, num_heads):
    """query/key/value: (1, d_model, L) f32 (PyTorch NCL). mask: (N, M) bool or None.
    Returns (out (1, d_model, N), scores_mean (1, N, M))."""
    del dist                                   # unused in the reference forward
    d_model, lq = query.shape[1], query.shape[2]
    lk = key.shape[2]
    dim = d_model // num_heads

    if mask is None:
        mask_f = jnp.ones((lq, lk), jnp.float32)
    else:
        mask_f = mask.astype(jnp.float32)

    vmem = functools.partial(pl.BlockSpec, memory_space=pltpu.MemorySpace.VMEM)
    kernel = functools.partial(_mha_fused_kernel, num_heads=num_heads, dim=dim)
    # TODO(synk): for large L, add a query-tile grid axis ("parallel" => uses both
    # v7x TensorCores) with a two-pass masked softmax — the global scores.min()
    # bias in the reference blocks single-pass online-softmax tiling.
    out_lc, smean = pl.pallas_call(
        kernel,
        in_specs=[vmem() for _ in range(8)],
        out_specs=[vmem(), vmem()],
        out_shape=[
            jax.ShapeDtypeStruct((lq, d_model), jnp.float32),
            jax.ShapeDtypeStruct((lq, lk), jnp.float32),
        ],
    )(query[0], key[0], value[0], params["w_qkv"], params["b_qkv"],
      params["w_merge_p"], params["b_merge"], mask_f)

    # Layout plumbing back to PyTorch NCL (kept outside the kernel so its store
    # stays lane-dense).
    return out_lc.T[None], smean[None]


# ------------------------------ pure-JAX reference --------------------------- #

def reference(params, query, key, value, mask, num_heads):
    d_model, L = query.shape[1], query.shape[2]
    dim = d_model // num_heads

    def proj(w_io, b_1o, x):
        y = jnp.einsum("io,bil->bol", w_io, x) + b_1o[0][None, :, None]
        return y.reshape(1, dim, num_heads, L)

    q = proj(params["w_q"], params["b_q"], query)
    k = proj(params["w_k"], params["b_k"], key)
    v = proj(params["w_v"], params["b_v"], value)
    scores = jnp.einsum("bdhn,bdhm->bhnm", q, k) / jnp.sqrt(jnp.float32(dim))
    if mask is not None:
        scores = scores + (jnp.min(scores) - 20.0) * (
            1.0 - mask.astype(jnp.float32))[None, None]
    prob = jax.nn.softmax(scores, axis=-1)
    xo = jnp.einsum("bhnm,bdhm->bdhn", prob, v)
    xf = xo.reshape(1, dim * num_heads, L)
    out = jnp.einsum("io,bil->bol", params["w_merge"], xf) \
        + params["b_merge"][0][None, :, None]
    return out, scores.mean(axis=1)


# ----------------------------------- main ------------------------------------ #

if __name__ == "__main__":
    num_heads, d_model, L = 4, 32, 16
    key0 = jax.random.PRNGKey(0)
    ks = jax.random.split(key0, 12)

    def make_linear(kw, kb):
        # Conv1d weight (out, in, 1) stored as (in, out); bias as (1, out).
        w = 0.1 * jax.random.normal(kw, (d_model, d_model), jnp.float32)
        b = 0.1 * jax.random.normal(kb, (1, d_model), jnp.float32)
        return w, b

    raw = {}
    raw["w_q"], raw["b_q"] = make_linear(ks[0], ks[1])
    raw["w_k"], raw["b_k"] = make_linear(ks[2], ks[3])
    raw["w_v"], raw["b_v"] = make_linear(ks[4], ks[5])
    raw["w_merge"], raw["b_merge"] = make_linear(ks[6], ks[7])
    params = prepare_params(raw, num_heads)

    query = jax.random.normal(ks[8], (1, d_model, L), jnp.float32)
    key_in = jax.random.normal(ks[9], (1, d_model, L), jnp.float32)
    value = jax.random.normal(ks[10], (1, d_model, L), jnp.float32)
    mask = jax.random.bernoulli(ks[11], 0.7, (L, L))          # bool, True = keep
    dist = jnp.zeros((L, L), jnp.float32)                     # unused in forward

    mha = jax.jit(functools.partial(multi_headed_attention, num_heads=num_heads))
    out, smean = mha(params, query, key_in, value, dist, mask)
    out = jax.block_until_ready(out)
    smean = jax.block_until_ready(smean)

    ref_out, ref_smean = reference(raw, query, key_in, value, mask, num_heads)
    assert out.shape == (1, d_model, L) and smean.shape == (1, L, L)
    assert jnp.allclose(out, ref_out, atol=2e-3, rtol=2e-3), \
        float(jnp.max(jnp.abs(out - ref_out)))
    assert jnp.allclose(smean, ref_smean, atol=1e-3, rtol=1e-3), \
        float(jnp.max(jnp.abs(smean - ref_smean)))

    print("KERNEL_OK")
</pallas_src>

<mosaic_0001>
module attributes {stable_mosaic.version = 11 : i64} {
  func.func @_mha_fused_kernel(%arg0: memref<32x16xf32, #tpu.memory_space<vmem>>, %arg1: memref<32x16xf32, #tpu.memory_space<vmem>>, %arg2: memref<32x16xf32, #tpu.memory_space<vmem>>, %arg3: memref<32x96xf32, #tpu.memory_space<vmem>>, %arg4: memref<1x96xf32, #tpu.memory_space<vmem>>, %arg5: memref<32x32xf32, #tpu.memory_space<vmem>>, %arg6: memref<1x32xf32, #tpu.memory_space<vmem>>, %arg7: memref<16x16xf32, #tpu.memory_space<vmem>>, %arg8: memref<16x32xf32, #tpu.memory_space<vmem>>, %arg9: memref<16x16xf32, #tpu.memory_space<vmem>>) attributes {dimension_semantics = [], scalar_prefetch = 0 : i64, scratch_operands = 0 : i64, tpu.core_type = #tpu.core_type<tc>} {
    %c0 = arith.constant 0 : index
    %c0_0 = arith.constant 0 : index
    %0 = vector.load %arg0[%c0, %c0_0] : memref<32x16xf32, #tpu.memory_space<vmem>>, vector<32x16xf32>
    %1 = tpu.transpose %0, [1, 0] : vector<32x16xf32> -> vector<16x32xf32>
    %c0_1 = arith.constant 0 : index
    %c0_2 = arith.constant 0 : index
    %2 = vector.load %arg1[%c0_1, %c0_2] : memref<32x16xf32, #tpu.memory_space<vmem>>, vector<32x16xf32>
    %3 = tpu.transpose %2, [1, 0] : vector<32x16xf32> -> vector<16x32xf32>
    %c0_3 = arith.constant 0 : index
    %c0_4 = arith.constant 0 : index
    %4 = vector.load %arg2[%c0_3, %c0_4] : memref<32x16xf32, #tpu.memory_space<vmem>>, vector<32x16xf32>
    %5 = tpu.transpose %4, [1, 0] : vector<32x16xf32> -> vector<16x32xf32>
    %6 = tpu.concatenate %1, %3, %5 in 0 : vector<16x32xf32>, vector<16x32xf32>, vector<16x32xf32> -> vector<48x32xf32>
    %c0_5 = arith.constant 0 : index
    %c0_6 = arith.constant 0 : index
    %7 = vector.load %arg3[%c0_5, %c0_6] : memref<32x96xf32, #tpu.memory_space<vmem>>, vector<32x96xf32>
    %cst = arith.constant dense<0.000000e+00> : vector<48x96xf32>
    %8 = tpu.matmul %6, %7, %cst {dimension_numbers = #tpu.dot_dimension_numbers<[1], [0], [0], [1], [0, 0, 1, 1], [], []>} : vector<48x32xf32>, vector<32x96xf32>, vector<48x96xf32> -> vector<48x96xf32>
    %c0_7 = arith.constant 0 : index
    %c0_8 = arith.constant 0 : index
    %9 = vector.load %arg4[%c0_7, %c0_8] : memref<1x96xf32, #tpu.memory_space<vmem>>, vector<1x96xf32>
    %10 = vector.broadcast %9 : vector<1x96xf32> to vector<48x96xf32>
    %11 = arith.addf %8, %10 : vector<48x96xf32>
    %cst_9 = arith.constant 8.000000e+00 : f32
    %12 = math.sqrt %cst_9 : f32
    %cst_10 = arith.constant 1.000000e+00 : f32
    %13 = arith.divf %cst_10, %12 : f32
    %c0_11 = arith.constant 0 : index
    %c0_12 = arith.constant 0 : index
    %14 = vector.load %arg7[%c0_11, %c0_12] : memref<16x16xf32, #tpu.memory_space<vmem>>, vector<16x16xf32>
    %cst_13 = arith.constant 1.000000e+00 : f32
    %15 = vector.broadcast %cst_13 : f32 to vector<16x16xf32>
    %16 = arith.subf %15, %14 : vector<16x16xf32>
    %17 = vector.extract_strided_slice %11 {offsets = [0, 0], sizes = [16, 8], strides = [1, 1]} : vector<48x96xf32> to vector<16x8xf32>
    %18 = vector.extract_strided_slice %11 {offsets = [16, 32], sizes = [16, 8], strides = [1, 1]} : vector<48x96xf32> to vector<16x8xf32>
    %19 = vector.extract_strided_slice %11 {offsets = [32, 64], sizes = [16, 8], strides = [1, 1]} : vector<48x96xf32> to vector<16x8xf32>
    %cst_14 = arith.constant dense<0.000000e+00> : vector<16x16xf32>
    %20 = tpu.matmul %17, %18, %cst_14 {dimension_numbers = #tpu.dot_dimension_numbers<[1], [1], [0], [0], [0, 0, 1, 0], [], []>} : vector<16x8xf32>, vector<16x8xf32>, vector<16x16xf32> -> vector<16x16xf32>
    %21 = vector.broadcast %13 : f32 to vector<16x16xf32>
    %22 = arith.mulf %20, %21 : vector<16x16xf32>
    %23 = vector.extract_strided_slice %11 {offsets = [0, 8], sizes = [16, 8], strides = [1, 1]} : vector<48x96xf32> to vector<16x8xf32>
    %24 = vector.extract_strided_slice %11 {offsets = [16, 40], sizes = [16, 8], strides = [1, 1]} : vector<48x96xf32> to vector<16x8xf32>
    %25 = vector.extract_strided_slice %11 {offsets = [32, 72], sizes = [16, 8], strides = [1, 1]} : vector<48x96xf32> to vector<16x8xf32>
    %cst_15 = arith.constant dense<0.000000e+00> : vector<16x16xf32>
    %26 = tpu.matmul %23, %24, %cst_15 {dimension_numbers = #tpu.dot_dimension_numbers<[1], [1], [0], [0], [0, 0, 1, 0], [], []>} : vector<16x8xf32>, vector<16x8xf32>, vector<16x16xf32> -> vector<16x16xf32>
    %27 = vector.broadcast %13 : f32 to vector<16x16xf32>
    %28 = arith.mulf %26, %27 : vector<16x16xf32>
    %29 = vector.extract_strided_slice %11 {offsets = [0, 16], sizes = [16, 8], strides = [1, 1]} : vector<48x96xf32> to vector<16x8xf32>
    %30 = vector.extract_strided_slice %11 {offsets = [16, 48], sizes = [16, 8], strides = [1, 1]} : vector<48x96xf32> to vector<16x8xf32>
    %31 = vector.extract_strided_slice %11 {offsets = [32, 80], sizes = [16, 8], strides = [1, 1]} : vector<48x96xf32> to vector<16x8xf32>
    %cst_16 = arith.constant dense<0.000000e+00> : vector<16x16xf32>
    %32 = tpu.matmul %29, %30, %cst_16 {dimension_numbers = #tpu.dot_dimension_numbers<[1], [1], [0], [0], [0, 0, 1, 0], [], []>} : vector<16x8xf32>, vector<16x8xf32>, vector<16x16xf32> -> vector<16x16xf32>
    %33 = vector.broadcast %13 : f32 to vector<16x16xf32>
    %34 = arith.mulf %32, %33 : vector<16x16xf32>
    %35 = vector.extract_strided_slice %11 {offsets = [0, 24], sizes = [16, 8], strides = [1, 1]} : vector<48x96xf32> to vector<16x8xf32>
    %36 = vector.extract_strided_slice %11 {offsets = [16, 56], sizes = [16, 8], strides = [1, 1]} : vector<48x96xf32> to vector<16x8xf32>
    %37 = vector.extract_strided_slice %11 {offsets = [32, 88], sizes = [16, 8], strides = [1, 1]} : vector<48x96xf32> to vector<16x8xf32>
    %cst_17 = arith.constant dense<0.000000e+00> : vector<16x16xf32>
    %38 = tpu.matmul %35, %36, %cst_17 {dimension_numbers = #tpu.dot_dimension_numbers<[1], [1], [0], [0], [0, 0, 1, 0], [], []>} : vector<16x8xf32>, vector<16x8xf32>, vector<16x16xf32> -> vector<16x16xf32>
    %39 = vector.broadcast %13 : f32 to vector<16x16xf32>
    %40 = arith.mulf %38, %39 : vector<16x16xf32>
    %41 = vector.shape_cast %22 : vector<16x16xf32> to vector<1x16x16xf32>
    %cst_18 = arith.constant dense<0x7F800000> : vector<1xf32>
    %42 = vector.multi_reduction <minimumf>, %41, %cst_18 [1, 2] : vector<1x16x16xf32> to vector<1xf32>
    %43 = vector.shape_cast %42 : vector<1xf32> to vector<1x1x1xf32>
    %44 = vector.extract %43[0, 0, 0] : f32 from vector<1x1x1xf32>
    %45 = vector.shape_cast %28 : vector<16x16xf32> to vector<1x16x16xf32>
    %cst_19 = arith.constant dense<0x7F800000> : vector<1xf32>
    %46 = vector.multi_reduction <minimumf>, %45, %cst_19 [1, 2] : vector<1x16x16xf32> to vector<1xf32>
    %47 = vector.shape_cast %46 : vector<1xf32> to vector<1x1x1xf32>
    %48 = vector.extract %47[0, 0, 0] : f32 from vector<1x1x1xf32>
    %49 = arith.minimumf %44, %48 : f32
    %50 = vector.shape_cast %34 : vector<16x16xf32> to vector<1x16x16xf32>
    %cst_20 = arith.constant dense<0x7F800000> : vector<1xf32>
    %51 = vector.multi_reduction <minimumf>, %50, %cst_20 [1, 2] : vector<1x16x16xf32> to vector<1xf32>
    %52 = vector.shape_cast %51 : vector<1xf32> to vector<1x1x1xf32>
    %53 = vector.extract %52[0, 0, 0] : f32 from vector<1x1x1xf32>
    %54 = arith.minimumf %49, %53 : f32
    %55 = vector.shape_cast %40 : vector<16x16xf32> to vector<1x16x16xf32>
    %cst_21 = arith.constant dense<0x7F800000> : vector<1xf32>
    %56 = vector.multi_reduction <minimumf>, %55, %cst_21 [1, 2] : vector<1x16x16xf32> to vector<1xf32>
    %57 = vector.shape_cast %56 : vector<1xf32> to vector<1x1x1xf32>
    %58 = vector.extract %57[0, 0, 0] : f32 from vector<1x1x1xf32>
    %59 = arith.minimumf %54, %58 : f32
    %cst_22 = arith.constant 2.000000e+01 : f32
    %60 = arith.subf %59, %cst_22 : f32
    %61 = vector.broadcast %60 : f32 to vector<16x16xf32>
    %62 = arith.mulf %61, %16 : vector<16x16xf32>
    %c0_23 = arith.constant 0 : index
    %c0_24 = arith.constant 0 : index
    %63 = vector.load %arg5[%c0_23, %c0_24] : memref<32x32xf32, #tpu.memory_space<vmem>>, vector<32x32xf32>
    %cst_25 = arith.constant 0.000000e+00 : f32
    %64 = vector.broadcast %cst_25 : f32 to vector<16x16xf32>
    %cst_26 = arith.constant 0.000000e+00 : f32
    %65 = vector.broadcast %cst_26 : f32 to vector<16x32xf32>
    %66 = arith.addf %22, %62 : vector<16x16xf32>
    %67 = arith.addf %64, %66 : vector<16x16xf32>
    %cst_27 = arith.constant dense<0xFF800000> : vector<16xf32>
    %68 = vector.multi_reduction <maximumf>, %66, %cst_27 [1] : vector<16x16xf32> to vector<16xf32>
    %69 = vector.shape_cast %68 : vector<16xf32> to vector<16x1xf32>
    %70 = vector.broadcast %69 : vector<16x1xf32> to vector<16x16xf32>
    %71 = arith.subf %66, %70 : vector<16x16xf32>
    %72 = math.exp %71 : vector<16x16xf32>
    %cst_28 = arith.constant dense<0.000000e+00> : vector<16xf32>
    %73 = vector.multi_reduction <add>, %72, %cst_28 [1] : vector<16x16xf32> to vector<16xf32>
    %74 = vector.shape_cast %73 : vector<16xf32> to vector<16x1xf32>
    %75 = tpu.reciprocal %74 {approx = true} : vector<16x1xf32> -> vector<16x1xf32>
    %76 = arith.mulf %74, %75 : vector<16x1xf32>
    %cst_29 = arith.constant 2.000000e+00 : f32
    %77 = vector.broadcast %cst_29 : f32 to vector<16x1xf32>
    %78 = arith.subf %77, %76 : vector<16x1xf32>
    %79 = arith.mulf %75, %78 : vector<16x1xf32>
    %80 = vector.broadcast %79 : vector<16x1xf32> to vector<16x16xf32>
    %81 = arith.mulf %72, %80 : vector<16x16xf32>
    %cst_30 = arith.constant dense<0.000000e+00> : vector<16x8xf32>
    %82 = tpu.matmul %81, %19, %cst_30 {dimension_numbers = #tpu.dot_dimension_numbers<[1], [0], [0], [1], [0, 0, 1, 1], [], []>} : vector<16x16xf32>, vector<16x8xf32>, vector<16x8xf32> -> vector<16x8xf32>
    %83 = vector.extract_strided_slice %63 {offsets = [0, 0], sizes = [8, 32], strides = [1, 1]} : vector<32x32xf32> to vector<8x32xf32>
    %cst_31 = arith.constant dense<0.000000e+00> : vector<16x32xf32>
    %84 = tpu.matmul %82, %83, %cst_31 {dimension_numbers = #tpu.dot_dimension_numbers<[1], [0], [0], [1], [0, 0, 1, 1], [], []>} : vector<16x8xf32>, vector<8x32xf32>, vector<16x32xf32> -> vector<16x32xf32>
    %85 = arith.addf %65, %84 : vector<16x32xf32>
    %86 = arith.addf %28, %62 : vector<16x16xf32>
    %87 = arith.addf %67, %86 : vector<16x16xf32>
    %cst_32 = arith.constant dense<0xFF800000> : vector<16xf32>
    %88 = vector.multi_reduction <maximumf>, %86, %cst_32 [1] : vector<16x16xf32> to vector<16xf32>
    %89 = vector.shape_cast %88 : vector<16xf32> to vector<16x1xf32>
    %90 = vector.broadcast %89 : vector<16x1xf32> to vector<16x16xf32>
    %91 = arith.subf %86, %90 : vector<16x16xf32>
    %92 = math.exp %91 : vector<16x16xf32>
    %cst_33 = arith.constant dense<0.000000e+00> : vector<16xf32>
    %93 = vector.multi_reduction <add>, %92, %cst_33 [1] : vector<16x16xf32> to vector<16xf32>
    %94 = vector.shape_cast %93 : vector<16xf32> to vector<16x1xf32>
    %95 = tpu.reciprocal %94 {approx = true} : vector<16x1xf32> -> vector<16x1xf32>
    %96 = arith.mulf %94, %95 : vector<16x1xf32>
    %cst_34 = arith.constant 2.000000e+00 : f32
    %97 = vector.broadcast %cst_34 : f32 to vector<16x1xf32>
    %98 = arith.subf %97, %96 : vector<16x1xf32>
    %99 = arith.mulf %95, %98 : vector<16x1xf32>
    %100 = vector.broadcast %99 : vector<16x1xf32> to vector<16x16xf32>
    %101 = arith.mulf %92, %100 : vector<16x16xf32>
    %cst_35 = arith.constant dense<0.000000e+00> : vector<16x8xf32>
    %102 = tpu.matmul %101, %25, %cst_35 {dimension_numbers = #tpu.dot_dimension_numbers<[1], [0], [0], [1], [0, 0, 1, 1], [], []>} : vector<16x16xf32>, vector<16x8xf32>, vector<16x8xf32> -> vector<16x8xf32>
    %103 = vector.extract_strided_slice %63 {offsets = [8, 0], sizes = [8, 32], strides = [1, 1]} : vector<32x32xf32> to vector<8x32xf32>
    %cst_36 = arith.constant dense<0.000000e+00> : vector<16x32xf32>
    %104 = tpu.matmul %102, %103, %cst_36 {dimension_numbers = #tpu.dot_dimension_numbers<[1], [0], [0], [1], [0, 0, 1, 1], [], []>} : vector<16x8xf32>, vector<8x32xf32>, vector<16x32xf32> -> vector<16x32xf32>
    %105 = arith.addf %85, %104 : vector<16x32xf32>
    %106 = arith.addf %34, %62 : vector<16x16xf32>
    %107 = arith.addf %87, %106 : vector<16x16xf32>
    %cst_37 = arith.constant dense<0xFF800000> : vector<16xf32>
    %108 = vector.multi_reduction <maximumf>, %106, %cst_37 [1] : vector<16x16xf32> to vector<16xf32>
    %109 = vector.shape_cast %108 : vector<16xf32> to vector<16x1xf32>
    %110 = vector.broadcast %109 : vector<16x1xf32> to vector<16x16xf32>
    %111 = arith.subf %106, %110 : vector<16x16xf32>
    %112 = math.exp %111 : vector<16x16xf32>
    %cst_38 = arith.constant dense<0.000000e+00> : vector<16xf32>
    %113 = vector.multi_reduction <add>, %112, %cst_38 [1] : vector<16x16xf32> to vector<16xf32>
    %114 = vector.shape_cast %113 : vector<16xf32> to vector<16x1xf32>
    %115 = tpu.reciprocal %114 {approx = true} : vector<16x1xf32> -> vector<16x1xf32>
    %116 = arith.mulf %114, %115 : vector<16x1xf32>
    %cst_39 = arith.constant 2.000000e+00 : f32
    %117 = vector.broadcast %cst_39 : f32 to vector<16x1xf32>
    %118 = arith.subf %117, %116 : vector<16x1xf32>
    %119 = arith.mulf %115, %118 : vector<16x1xf32>
    %120 = vector.broadcast %119 : vector<16x1xf32> to vector<16x16xf32>
    %121 = arith.mulf %112, %120 : vector<16x16xf32>
    %cst_40 = arith.constant dense<0.000000e+00> : vector<16x8xf32>
    %122 = tpu.matmul %121, %31, %cst_40 {dimension_numbers = #tpu.dot_dimension_numbers<[1], [0], [0], [1], [0, 0, 1, 1], [], []>} : vector<16x16xf32>, vector<16x8xf32>, vector<16x8xf32> -> vector<16x8xf32>
    %123 = vector.extract_strided_slice %63 {offsets = [16, 0], sizes = [8, 32], strides = [1, 1]} : vector<32x32xf32> to vector<8x32xf32>
    %cst_41 = arith.constant dense<0.000000e+00> : vector<16x32xf32>
    %124 = tpu.matmul %122, %123, %cst_41 {dimension_numbers = #tpu.dot_dimension_numbers<[1], [0], [0], [1], [0, 0, 1, 1], [], []>} : vector<16x8xf32>, vector<8x32xf32>, vector<16x32xf32> -> vector<16x32xf32>
    %125 = arith.addf %105, %124 : vector<16x32xf32>
    %126 = arith.addf %40, %62 : vector<16x16xf32>
    %127 = arith.addf %107, %126 : vector<16x16xf32>
    %cst_42 = arith.constant dense<0xFF800000> : vector<16xf32>
    %128 = vector.multi_reduction <maximumf>, %126, %cst_42 [1] : vector<16x16xf32> to vector<16xf32>
    %129 = vector.shape_cast %128 : vector<16xf32> to vector<16x1xf32>
    %130 = vector.broadcast %129 : vector<16x1xf32> to vector<16x16xf32>
    %131 = arith.subf %126, %130 : vector<16x16xf32>
    %132 = math.exp %131 : vector<16x16xf32>
    %cst_43 = arith.constant dense<0.000000e+00> : vector<16xf32>
    %133 = vector.multi_reduction <add>, %132, %cst_43 [1] : vector<16x16xf32> to vector<16xf32>
    %134 = vector.shape_cast %133 : vector<16xf32> to vector<16x1xf32>
    %135 = tpu.reciprocal %134 {approx = true} : vector<16x1xf32> -> vector<16x1xf32>
    %136 = arith.mulf %134, %135 : vector<16x1xf32>
    %cst_44 = arith.constant 2.000000e+00 : f32
    %137 = vector.broadcast %cst_44 : f32 to vector<16x1xf32>
    %138 = arith.subf %137, %136 : vector<16x1xf32>
    %139 = arith.mulf %135, %138 : vector<16x1xf32>
    %140 = vector.broadcast %139 : vector<16x1xf32> to vector<16x16xf32>
    %141 = arith.mulf %132, %140 : vector<16x16xf32>
    %cst_45 = arith.constant dense<0.000000e+00> : vector<16x8xf32>
    %142 = tpu.matmul %141, %37, %cst_45 {dimension_numbers = #tpu.dot_dimension_numbers<[1], [0], [0], [1], [0, 0, 1, 1], [], []>} : vector<16x16xf32>, vector<16x8xf32>, vector<16x8xf32> -> vector<16x8xf32>
    %143 = vector.extract_strided_slice %63 {offsets = [24, 0], sizes = [8, 32], strides = [1, 1]} : vector<32x32xf32> to vector<8x32xf32>
    %cst_46 = arith.constant dense<0.000000e+00> : vector<16x32xf32>
    %144 = tpu.matmul %142, %143, %cst_46 {dimension_numbers = #tpu.dot_dimension_numbers<[1], [0], [0], [1], [0, 0, 1, 1], [], []>} : vector<16x8xf32>, vector<8x32xf32>, vector<16x32xf32> -> vector<16x32xf32>
    %145 = arith.addf %125, %144 : vector<16x32xf32>
    %c0_47 = arith.constant 0 : index
    %c0_48 = arith.constant 0 : index
    %146 = vector.load %arg6[%c0_47, %c0_48] : memref<1x32xf32, #tpu.memory_space<vmem>>, vector<1x32xf32>
    %147 = vector.broadcast %146 : vector<1x32xf32> to vector<16x32xf32>
    %148 = arith.addf %145, %147 : vector<16x32xf32>
    %c0_49 = arith.constant 0 : index
    %c0_50 = arith.constant 0 : index
    %149 = vector.load %arg8[%c0_49, %c0_50] : memref<16x32xf32, #tpu.memory_space<vmem>>, vector<16x32xf32>
    tpu.vector_store %arg8[%c0_49, %c0_50], %148 {strides = array<i32>} : memref<16x32xf32, #tpu.memory_space<vmem>>, vector<16x32xf32>,
    %cst_51 = arith.constant 2.500000e-01 : f32
    %150 = vector.broadcast %cst_51 : f32 to vector<16x16xf32>
    %151 = arith.mulf %127, %150 : vector<16x16xf32>
    %c0_52 = arith.constant 0 : index
    %c0_53 = arith.constant 0 : index
    %152 = vector.load %arg9[%c0_52, %c0_53] : memref<16x16xf32, #tpu.memory_space<vmem>>, vector<16x16xf32>
    tpu.vector_store %arg9[%c0_52, %c0_53], %151 {strides = array<i32>} : memref<16x16xf32, #tpu.memory_space<vmem>>, vector<16x16xf32>,
    return
  }
}

</mosaic_0001>

<bundles_post_ra>
// kernel: multi_headed_attention.1
= control target key start
LH: loop header
LB: loop body
LE: loop exit
PB: predicated region body
PF: predicated region fallthrough
CT: control target
= control target key end

     0   :  { %15 = vsyncpa [#allocation3], 0  ;;  %s1345_s0 = inlined_call_operand.vmem [shape: f32[32,16], index: 0, kind: input, shape index: {}]   ;;  %s1346_s1 = inlined_call_operand.vmem [shape: f32[32,16], index: 1, kind: input, shape index: {}]   ;;  %s1347_s2 = inlined_call_operand.vmem [shape: f32[32,16], index: 2, kind: input, shape index: {}]   ;;  %s1348_s3 = inlined_call_operand.vmem [shape: f32[32,96], index: 3, kind: input, shape index: {}]   ;;  %s1349_s4 = inlined_call_operand.vmem [shape: f32[1,96], index: 4, kind: input, shape index: {}]   ;;  %s1350_s5 = inlined_call_operand.vmem [shape: f32[32,32], index: 5, kind: input, shape index: {}]   ;;  %s1351_s6 = inlined_call_operand.vmem [shape: f32[1,32], index: 6, kind: input, shape index: {}]   ;;  %s1352_s7 = inlined_call_operand.vmem [shape: f32[16,16], index: 7, kind: input, shape index: {}]   ;;  %s1353_s8 = inlined_call_operand.hbm [shape: f32[16,32], index: 8, kind: output, shape index: {0}]   ;;  %s1354_s9 = inlined_call_operand.hbm [shape: f32[16,16], index: 9, kind: output, shape index: {1}]  }
   0x1   :  { %v33_v0 = vld [vmem:[%s1345_s0] sm:$0xff]  ;;  %v144_v2 = vld [vmem:[%s1348_s3 + $0x18] sm:$0xff]  ;;  %v143_v3 = vld [vmem:[%s1348_s3 + $0x10] sm:$0xff] }
   0x2   :  { %v69_v1 = vld [vmem:[%s1346_s1] sm:$0xff]  ;;  %37 = vxpose.xlu0.b32.start [1/4] (short) (narrow) %v33_v0, 16  ;;  %180 = vmatpush.msra.mxu0 %v144_v2  ;;  %v142_v4 = vld [vmem:[%s1348_s3 + $0x8] sm:$0xff] }
   0x3   :  { %73 = vxpose.xlu1.b32.start [1/4] (short) (narrow) %v69_v1, 16 }
   0x4   :  { %16 = vsyncpa [#allocation5], 0  ;;  %181 = vmatpush.msra.mxu0 %v143_v3  ;;  %v34_v5 = vld [vmem:[%s1345_s0 + $0x8] sm:$0xff]  ;;  %v141_v7 = vld [vmem:[%s1348_s3] sm:$0xff]  ;;  %vm149_vm0 = vcmask 261120   ;;  %s1041_s12 = smov 88  }
   0x5   :  { %v70_v6 = vld [vmem:[%s1346_s1 + $0x8] sm:$0xff]  ;;  %v35_v8 = vld [vmem:[%s1345_s0 + $0x10] sm:$0xff]  ;;  %v36_v10 = vld [vmem:[%s1345_s0 + $0x18] sm:$0xff]  ;;  %s1042_s13 = smov 96   ;;  %s1043_s14 = smov 120   ;;  %vm213_vm1 = vcmask 64512  }
   0x6   :  { %182 = vmatpush.msra.mxu0 %v142_v4  ;;  %v71_v9 = vld [vmem:[%s1346_s1 + $0x10] sm:$0xff]  ;;  %v72_v11 = vld [vmem:[%s1346_s1 + $0x18] sm:$0xff]  ;;  %v1148_v18 = vld [vmem:[%s1349_s4] ss:$0 sm:$0xff]  ;;  %s1040_s1 = smov 80   ;;  %s1044_s15 = smov 112  }
   0x7   :  { %s1045_s4 = smov 104   ;;  %s1046_s16 = smov 72   ;;  %vm372_vm2 = vcmask 130048   ;;  %v105_v3 = vld [vmem:[%s1347_s2] sm:$0xff]  ;;  %v106_v4 = vld [vmem:[%s1347_s2 + $0x8] sm:$0xff] }
   0x8   :  { %183 = vmatpush.msra.mxu0 %v141_v7 }
   0xa   :  { %38 = vxpose.xlu0.b32.cont [2/4] (short) (narrow) %v34_v5, 16  ;;  %v107_v5 = vld [vmem:[%s1347_s2 + $0x10] sm:$0xff] }
   0xb   :  { %74 = vxpose.xlu1.b32.cont [2/4] (short) (narrow) %v70_v6, 16  ;;  %v108_v6 = vld [vmem:[%s1347_s2 + $0x18] sm:$0xff] }
  0x12   :  { %39 = vxpose.xlu0.b32.cont [3/4] (short) (narrow) %v35_v8, 16 }
  0x13   :  { %75 = vxpose.xlu1.b32.cont [3/4] (short) (narrow) %v71_v9, 16 }
  0x1a   :  { %40 = vxpose.xlu0.b32.end [4/4] (short) (narrow) %v36_v10, 16 }
  0x1b   :  { %76 = vxpose.xlu1.b32.end [4/4] (short) (narrow) %v72_v11, 16 }
  0xa6   :  { %v53_v12 = vpop.trf.xlu0 }
  0xa7   :  { %870 = vmatmul.msk.f32.vlgmr.msra.gmra.mxu0 %vm149_vm0, %v53_v12  ;;  %v89_v14 = vpop.trf.xlu1 }
  0xae   :  { %v54_v13 = vpop.trf.xlu0 }
  0xaf   :  { %871 = vmatmul.msk.f32.gmra.mxu0 %vm149_vm0, %v54_v13  ;;  %v90_v15 = vpop.trf.xlu1 }
  0xb7   :  { %872 = vmatmul.msk.f32.gmra.mxu0 %vm149_vm0, %v89_v14 }
  0xbf   :  { %873 = vmatmul.msk.f32.gmra.mxu0 %vm149_vm0, %v90_v15 }
 0x124   :  { %v185_v16 = vpop.f32.mrf.mxu0 }
 0x125   :  { %v186_v21 = vadd.f32 %v1148_v18, %v185_v16 }
 0x12c   :  { %v188_v17 = vpop.f32.mrf.mxu0 }
 0x12d   :  { %v189_v22 = vadd.f32 %v1148_v18, %v188_v17 }
 0x134   :  { %v191_v19 = vpop.f32.mrf.mxu0 }
 0x135   :  { %v192_v20 = vadd.f32 %v1148_v18, %v191_v19 }
 0x137   :  { %294 = vrot.lane.b32.xlu1 %v192_v20, %s1040_s1  ;;  %253 = vrot.lane.b32.xlu0 %v192_v20, %s1041_s12 }
 0x138   :  { %209 = vrot.lane.b32.xlu2 %v192_v20, %s1042_s13 }
 0x13c   :  { %v194_v23 = vpop.f32.mrf.mxu0 }
 0x13d   :  { %v195_v24 = vadd.f32 %v1148_v18, %v194_v23 }
 0x140   :  { %249 = vrot.lane.b32.xlu2 %v186_v21, %s1043_s14 }
 0x148   :  { %290 = vrot.lane.b32.xlu2 %v186_v21, %s1044_s15 }
 0x150   :  { %251 = vrot.lane.b32.xlu2 %v189_v22, %s1043_s14  ;;  %s1050_s14 = smov 40  }
 0x158   :  { %331 = vrot.lane.b32.xlu2 %v186_v21, %s1045_s4 }
 0x160   :  { %335 = vrot.lane.b32.xlu2 %v192_v20, %s1046_s16 }
 0x168   :  { %211 = vrot.lane.b32.xlu2 %v195_v24, %s1042_s13  ;;  %s1049_s13 = smov 48  }
 0x170   :  { %255 = vrot.lane.b32.xlu2 %v195_v24, %s1041_s12  ;;  %s1048_s12 = smov 64  }
 0x178   :  { %296 = vrot.lane.b32.xlu2 %v195_v24, %s1040_s1 }
 0x180   :  { %337 = vrot.lane.b32.xlu2 %v195_v24, %s1046_s16 }
 0x188   :  { %292 = vrot.lane.b32.xlu2 %v189_v22, %s1044_s15 }
 0x190   :  { %333 = vrot.lane.b32.xlu2 %v189_v22, %s1045_s4 }
 0x192   :  { %v210_v25 = vpop.permute.xlu2 %209 }
 0x19a   :  { %v250_v26 = vpop.permute.xlu2 %249 }
 0x1a2   :  { %v291_v27 = vpop.permute.xlu2 %290 }
 0x1a9   :  { %v254_v33 = vpop.permute.xlu0 %253  ;;  %v295_v35 = vpop.permute.xlu1 %294 }
 0x1aa   :  { %v252_v28 = vpop.permute.xlu2 %251 }
 0x1b2   :  { %v332_v29 = vpop.permute.xlu2 %331 }
 0x1ba   :  { %v336_v30 = vpop.permute.xlu2 %335 }
 0x1c2   :  { %v212_v31 = vpop.permute.xlu2 %211 }
 0x1c3   :  { %876 = vmatpush.xpose.msk.msra.mxu1 %vm213_vm1, %v212_v31 }
 0x1c7   :  { %877 = vmatpush.xpose.msk.msra.mxu1 %vm213_vm1, %v210_v25 }
 0x1ca   :  { %878 = vmatmul.msk.f32.vlgmr.msra.gmra.mxu1 %vm213_vm1, %v186_v21  ;;  %v256_v32 = vpop.permute.xlu2 %255 }
 0x1cb   :  { %880 = vmatpush.xpose.msk.msra.mxu2 %vm213_vm1, %v256_v32 }
 0x1cf   :  { %881 = vmatpush.xpose.msk.msra.mxu2 %vm213_vm1, %v254_v33 }
 0x1d2   :  { %879 = vmatmul.msk.f32.gmra.mxu1 %vm213_vm1, %v189_v22  ;;  %882 = vmatmul.msk.f32.vlgmr.msra.gmra.mxu2 %vm213_vm1, %v250_v26  ;;  %v297_v34 = vpop.permute.xlu2 %296 }
 0x1d3   :  { %884 = vmatpush.xpose.msk.msra.mxu3 %vm213_vm1, %v297_v34 }
 0x1d7   :  { %885 = vmatpush.xpose.msk.msra.mxu3 %vm213_vm1, %v295_v35 }
 0x1da   :  { %883 = vmatmul.msk.f32.gmra.mxu2 %vm213_vm1, %v252_v28  ;;  %886 = vmatmul.msk.f32.vlgmr.msra.gmra.mxu3 %vm213_vm1, %v291_v27  ;;  %v338_v36 = vpop.permute.xlu2 %337 }
 0x1db   :  { %888 = vmatpush.xpose.msk.msrb.mxu1 %vm213_vm1, %v338_v36  ;;  %v203_v36 = vld [vmem:[%s1352_s7] sm:$0xff] }
 0x1df   :  { %889 = vmatpush.xpose.msk.msrb.mxu1 %vm213_vm1, %v336_v30 }
 0x1e2   :  { %890 = vmatmul.msk.f32.vlgmr.msrb.gmra.mxu1 %vm213_vm1, %v332_v29  ;;  %v293_v37 = vpop.permute.xlu2 %292 }
 0x1e3   :  { %887 = vmatmul.msk.f32.gmra.mxu3 %vm213_vm1, %v293_v37  ;;  %v204_v37 = vld [vmem:[%s1352_s7 + $0x8] sm:$0xff]  ;;  %s1047_s7 = smov 56  }
 0x1ea   :  { %v334_v38 = vpop.permute.xlu2 %333 }
 0x1eb   :  { %891 = vmatmul.msk.f32.gmra.mxu1 %vm213_vm1, %v334_v38  ;;  %v205_v38 = vsub.f32 1.0, %v203_v36 }
 0x247   :  { %v241_v39 = vpop.f32.mrf.mxu1 }
 0x248   :  { %v1170_v40 = vmul.f32 0.35355338, %v241_v39  ;;  %v206_v39 = vsub.f32 1.0, %v204_v37 }
 0x24a   :  { %v373_v43 = vsel %vm372_vm2, %v1170_v40, inf }
 0x24f   :  { %v244_v41 = vpop.f32.mrf.mxu1 }
 0x250   :  { %v1172_v42 = vmul.f32 0.35355338, %v244_v41 }
 0x252   :  { %v374_v44 = vsel %vm372_vm2, %v1172_v42, inf }
 0x253   :  { %v375_v45 = vmin.f32 %v373_v43, %v374_v44 }
 0x255   :  { %376 = vmin.xlane.f32.xlu2 %v375_v45  ;;  %v282_v46 = vpop.f32.mrf.mxu2 }
 0x256   :  { %v1178_v47 = vmul.f32 0.35355338, %v282_v46 }
 0x258   :  { %v385_v52 = vsel %vm372_vm2, %v1178_v47, inf }
 0x25d   :  { %v285_v48 = vpop.f32.mrf.mxu2  ;;  %v323_v49 = vpop.f32.mrf.mxu3 }
 0x25e   :  { %v1180_v50 = vmul.f32 0.35355338, %v285_v48  ;;  %v1186_v55 = vmul.f32 0.35355338, %v323_v49 }
 0x25f   :  { %v364_v51 = vpop.f32.mrf.mxu1 }
 0x260   :  { %v386_v53 = vsel %vm372_vm2, %v1180_v50, inf  ;;  %v1188_v57 = vmul.f32 0.35355338, %v364_v51  ;;  %v398_v61 = vsel %vm372_vm2, %v1186_v55, inf }
 0x261   :  { %v387_v54 = vmin.f32 %v385_v52, %v386_v53 }
 0x262   :  { %v411_v0 = vsel %vm372_vm2, %v1188_v57, inf }
 0x263   :  { %388 = vmin.xlane.f32.xlu1 %v387_v54 }
 0x266   :  { %v326_v56 = vpop.f32.mrf.mxu3 }
 0x267   :  { %v1190_v58 = vmul.f32 0.35355338, %v326_v56 }
 0x268   :  { %v367_v59 = vpop.f32.mrf.mxu1 }
 0x269   :  { %v1192_v60 = vmul.f32 0.35355338, %v367_v59  ;;  %v399_v62 = vsel %vm372_vm2, %v1190_v58, inf }
 0x26a   :  { %v400_v63 = vmin.f32 %v398_v61, %v399_v62 }
 0x26b   :  { %v412_v1 = vsel %vm372_vm2, %v1192_v60, inf }
 0x26c   :  { %401 = vmin.xlane.f32.xlu2 %v400_v63  ;;  %v413_v2 = vmin.f32 %v411_v0, %v412_v1 }
 0x26e   :  { %414 = vmin.xlane.f32.xlu0 %v413_v2 }
 0x295   :  { %109 = vxpose.xlu2.b32.start [1/4] (short) (narrow) %v105_v3, 16 }
 0x29d   :  { %110 = vxpose.xlu2.b32.cont [2/4] (short) (narrow) %v106_v4, 16 }
 0x2a5   :  { %111 = vxpose.xlu2.b32.cont [3/4] (short) (narrow) %v107_v5, 16 }
 0x2ad   :  { %112 = vxpose.xlu2.b32.end [4/4] (short) (narrow) %v108_v6, 16 }
 0x2c8   :  { %v377_v7 = vpop.xlane.xlu2 %376 }
 0x2c9   :  { %v378_v8 = vrot.slane %v377_v7, 4 }
 0x2cb   :  { %v379_v9 = vmin.f32 %v377_v7, %v378_v8 }
 0x2cd   :  { %v380_v10 = vrot.slane %v379_v9, 2 }
 0x2cf   :  { %v381_v11 = vmin.f32 %v379_v9, %v380_v10 }
 0x2d1   :  { %v382_v12 = vrot.slane %v381_v11, 1 }
 0x2d3   :  { %v383_v13 = vmin.f32 %v381_v11, %v382_v12 }
 0x2d5   :  { %910 = vpush %v383_v13 }
 0x2d6   :  { %v389_v14 = vpop.xlane.xlu1 %388 }
 0x2d7   :  { %v390_v15 = vrot.slane %v389_v14, 4 }
 0x2d9   :  { %v391_v16 = vmin.f32 %v389_v14, %v390_v15 }
 0x2db   :  { %v392_v17 = vrot.slane %v391_v16, 2 }
 0x2dd   :  { %v393_v19 = vmin.f32 %v391_v16, %v392_v17 }
 0x2df   :  { %v402_v20 = vpop.xlane.xlu2 %401  ;;  %v394_v21 = vrot.slane %v393_v19, 1 }
 0x2e0   :  { %v403_v22 = vrot.slane %v402_v20, 4 }
 0x2e1   :  { %v415_v23 = vpop.xlane.xlu0 %414  ;;  %v395_v24 = vmin.f32 %v393_v19, %v394_v21 }
 0x2e2   :  { %v404_v25 = vmin.f32 %v402_v20, %v403_v22  ;;  %v416_v26 = vrot.slane %v415_v23, 4 }
 0x2e3   :  { %912 = vpush %v395_v24 }
 0x2e4   :  { %v405_v27 = vrot.slane %v404_v25, 2  ;;  %v417_v28 = vmin.f32 %v415_v23, %v416_v26 }
 0x2e6   :  { %v418_v29 = vrot.slane %v417_v28, 2  ;;  %v406_v30 = vmin.f32 %v404_v25, %v405_v27 }
 0x2e8   :  { %v407_v31 = vrot.slane %v406_v30, 1  ;;  %v419_v32 = vmin.f32 %v417_v28, %v418_v29 }
 0x2ea   :  { %v408_v33 = vmin.f32 %v406_v30, %v407_v31  ;;  %v420_v34 = vrot.slane %v419_v32, 1 }
 0x2ec   :  { %914 = vpush %v408_v33  ;;  %v421_v35 = vmin.f32 %v419_v32, %v420_v34 }
 0x2ee   :  { %916 = vpush %v421_v35 }
 0x306   :  { %s911_s2 = spop %910 }
 0x314   :  { %s913_s25 = spop %912 }
 0x315   :  { %s397_s26 = smin.f32 %s913_s25, %s911_s2  ;;  %s853_s2 = sshll.u32 %s1354_s9, 4  ;;  %s854_s2 = int_to_ptr.hbm [resolvable:$true] %s853_s2 }
 0x316   :  { %s1052_s25 = smov 128   ;;  %s1054_s9 = smov [#allocation2]  }
 0x317   :  { %s838_s29 = sshll.u32 %s1054_s9, 4  ;;  %s839_s29 = int_to_ptr.vmem [resolvable:$true] %s838_s29 }
 0x31d   :  { %s915_s27 = spop %914 }
 0x31e   :  { %s410_s11 = smin.f32 %s915_s27, %s397_s26  ;;  %s1053_s26 = smov 8  }
 0x31f   :  { %s917_s0 = spop %916 }
 0x320   :  { %s423_s3 = smin.f32 %s917_s0, %s410_s11  ;;  %s840_s11 = sshll.u32 %s1353_s8, 4  ;;  %s841_s11 = int_to_ptr.hbm [resolvable:$true] %s840_s11 }
 0x321   :  { %s892_s1 = sadd.f32 -20.0, %s423_s3 }
 0x323   :  { %v425_v41 = vstv %s892_s1 }
 0x324   :  { %v426_v43 = vmul.f32 %v425_v41, %v205_v38  ;;  %v427_v44 = vmul.f32 %v425_v41, %v206_v39 }
 0x326   :  { %v1221_v45 = vadd.f32 %v427_v44, %v1190_v58  ;;  %v501_v46 = vadd.f32 %v426_v43, %v1178_v47  ;;  %v502_v48 = vadd.f32 %v427_v44, %v1180_v50  ;;  %v1226_v49 = vadd.f32 %v426_v43, %v1170_v40 }
 0x327   :  { %v1229_v51 = vadd.f32 %v427_v44, %v1172_v42  ;;  %v1237_v47 = vadd.f32 %v426_v43, %v1186_v55  ;;  %v1242_v42 = vadd.f32 %v427_v44, %v1192_v60  ;;  %v1245_v58 = vadd.f32 %v426_v43, %v1188_v57 }
 0x328   :  { %v633_v52 = vsel %vm372_vm2, %v1221_v45, -inf  ;;  %v505_v53 = vsel %vm372_vm2, %v501_v46, -inf  ;;  %v503_v54 = vadd.f32 %v501_v46, %v1226_v49  ;;  %v508_v0 = vsel %vm372_vm2, %v502_v48, -inf }
 0x329   :  { %634 = vmax.xlane.f32.xlu2 %v633_v52  ;;  %506 = vmax.xlane.f32.xlu1 %v505_v53  ;;  %v504_v56 = vadd.f32 %v502_v48, %v1229_v51  ;;  %v436_v15 = vsel %vm372_vm2, %v1226_v49, -inf  ;;  %v439_v16 = vsel %vm372_vm2, %v1229_v51, -inf  ;;  %v630_v17 = vsel %vm372_vm2, %v1237_v47, -inf }
 0x32a   :  { %v628_v40 = vadd.f32 %v1237_v47, %v503_v54  ;;  %v728_v19 = vsel %vm372_vm2, %v1245_v58, -inf }
 0x32b   :  { %v629_v50 = vadd.f32 %v1221_v45, %v504_v56 }
 0x32c   :  { %v726_v61 = vadd.f32 %v1245_v58, %v628_v40 }
 0x32d   :  { %v727_v59 = vadd.f32 %v1242_v42, %v629_v50 }
 0x32e   :  { %v125_v62 = vpop.trf.xlu2  ;;  %v830_v55 = vmul.f32 0.25, %v726_v61 }
 0x32f   :  { %874 = vmatmul.msk.f32.gmra.mxu0 %vm149_vm0, %v125_v62  ;;  %v831_v63 = vmul.f32 0.25, %v727_v59 }
 0x330   :  { %832 = vst.msk [vmem:[#allocation4] sm:$0xff] %vm372_vm2, %v830_v55 }
 0x331   :  { %509 = vmax.xlane.f32.xlu1 %v508_v0  ;;  %833 = vst.msk [vmem:[#allocation4 + $0x8] sm:$0xff] %vm372_vm2, %v831_v63 }
 0x336   :  { %v126_v60 = vpop.trf.xlu2 }
 0x337   :  { %875 = vmatmul.msk.f32.gmra.mxu0 %vm149_vm0, %v126_v60 }
 0x39c   :  { %v507_v57 = vpop.xlane.xlu1 %506  ;;  %v635_v29 = vpop.xlane.xlu2 %634 }
 0x39d   :  { %v511_v1 = vsub.f32 %v501_v46, %v507_v57  ;;  %v637_v37 = vsub.f32 %v1221_v45, %v635_v29 }
 0x39f   :  { %v513_v2 = vmul.f32 1.442695, %v511_v1  ;;  %v640_v46 = vmul.f32 1.442695, %v637_v37 }
 0x3a1   :  { %956 = vpow2.f32 %v513_v2 }
 0x3a4   :  { %v510_v3 = vpop.xlane.xlu1 %509 }
 0x3a5   :  { %v512_v4 = vsub.f32 %v502_v48, %v510_v3 }
 0x3a7   :  { %v957_v5 = vpop.eup %956  ;;  %v515_v6 = vmul.f32 1.442695, %v512_v4 }
 0x3a8   :  { %v517_v7 = vsel %vm372_vm2, %v957_v5, 0.0 }
 0x3a9   :  { %958 = vpow2.f32 %v515_v6  ;;  %518 = vadd.xlane.f32.xlu1 %v517_v7 }
 0x3ac   :  { %v197_v8 = vpop.f32.mrf.mxu0 }
 0x3ad   :  { %v198_v11 = vadd.f32 %v1148_v18, %v197_v8 }
 0x3af   :  { %v959_v9 = vpop.eup %958 }
 0x3b0   :  { %v520_v10 = vsel %vm372_vm2, %v959_v9, 0.0 }
 0x3b1   :  { %521 = vadd.xlane.f32.xlu0 %v520_v10 }
 0x3b4   :  { %v200_v12 = vpop.f32.mrf.mxu0 }
 0x3b5   :  { %v201_v13 = vadd.f32 %v1148_v18, %v200_v12  ;;  %v731_v18 = vsel %vm372_vm2, %v1242_v42, -inf }
 0x3b7   :  { %v1258_v14 = vpack.i.bf16 %v198_v11, %v201_v13 }
 0x3b9   :  { %437 = vmax.xlane.f32.xlu0 %v436_v15 }
 0x3c1   :  { %440 = vmax.xlane.f32.xlu0 %v439_v16 }
 0x3c2   :  { %935 = vrot.lane.b32.xlu1 %v1258_v14, %s1047_s7 }
 0x3c9   :  { %631 = vmax.xlane.f32.xlu0 %v630_v17 }
 0x3d1   :  { %732 = vmax.xlane.f32.xlu0 %v731_v18 }
 0x3e5   :  { %940 = vrot.lane.b32.xlu0 %v1258_v14, %s1048_s12 }
 0x3ec   :  { %729 = vmax.xlane.f32.xlu1 %v728_v19 }
 0x405   :  { %945 = vrot.lane.b32.xlu1 %v1258_v14, %s1049_s13 }
 0x41c   :  { %v519_v20 = vpop.xlane.xlu1 %518 }
 0x41d   :  { %960 = vrcp.f32 %v519_v20 }
 0x423   :  { %v961_v22 = vpop.eup %960 }
 0x424   :  { %v522_v21 = vpop.xlane.xlu0 %521  ;;  %v525_v23 = vmul.f32 %v961_v22, %v519_v20 }
 0x425   :  { %962 = vrcp.f32 %v522_v21 }
 0x426   :  { %v527_v27 = vsub.f32 2.0, %v525_v23 }
 0x428   :  { %v529_v30 = vmul.f32 %v961_v22, %v527_v27 }
 0x42a   :  { %v531_v41 = vmul.f32 %v957_v5, %v529_v30 }
 0x42b   :  { %v963_v28 = vpop.eup %962 }
 0x42c   :  { %v438_v24 = vpop.xlane.xlu0 %437  ;;  %v526_v31 = vmul.f32 %v963_v28, %v522_v21 }
 0x42d   :  { %v442_v25 = vsub.f32 %v1226_v49, %v438_v24 }
 0x42e   :  { %v528_v43 = vsub.f32 2.0, %v526_v31 }
 0x42f   :  { %v444_v26 = vmul.f32 1.442695, %v442_v25 }
 0x430   :  { %v530_v48 = vmul.f32 %v963_v28, %v528_v43 }
 0x431   :  { %964 = vpow2.f32 %v444_v26 }
 0x432   :  { %v532_v54 = vmul.f32 %v959_v9, %v530_v48 }
 0x434   :  { %v441_v32 = vpop.xlane.xlu0 %440  ;;  %v936_v33 = vpop.permute.xlu1 %935 }
 0x435   :  { %v443_v34 = vsub.f32 %v1229_v51, %v441_v32  ;;  %v937_v35 = vunpack.i.l.bf16 %v936_v33  ;;  %v938_v39 = vunpack.i.h.bf16 %v936_v33 }
 0x437   :  { %v1275_v36 = vpop.eup %964  ;;  %v446_v38 = vmul.f32 1.442695, %v443_v34  ;;  %559 = vmatpush.msrb.mxu3 %v937_v35 }
 0x438   :  { %v448_v44 = vsel %vm372_vm2, %v1275_v36, 0.0 }
 0x439   :  { %966 = vpow2.f32 %v446_v38  ;;  %449 = vadd.xlane.f32.xlu0 %v448_v44  ;;  %560 = vmatpush.msrb.mxu3 %v938_v39 }
 0x43a   :  { %895 = vmatmul.msk.f32.vlgmr.msrb.gmra.mxu3 %vm372_vm2, %v531_v41  ;;  %968 = vpow2.f32 %v640_v46 }
 0x43c   :  { %v632_v49 = vpop.xlane.xlu0 %631 }
 0x43d   :  { %v636_v51 = vsub.f32 %v1237_v47, %v632_v49 }
 0x43f   :  { %v967_v52 = vpop.eup %966  ;;  %v638_v45 = vmul.f32 1.442695, %v636_v51 }
 0x440   :  { %v451_v53 = vsel %vm372_vm2, %v967_v52, 0.0  ;;  %v1284_v56 = vpop.eup %968 }
 0x441   :  { %970 = vpow2.f32 %v638_v45  ;;  %452 = vadd.xlane.f32.xlu0 %v451_v53  ;;  %v645_v47 = vsel %vm372_vm2, %v1284_v56, 0.0  ;;  %v428_v53 = vld [vmem:[%s1350_s5] sm:$0xff] }
 0x442   :  { %896 = vmatmul.msk.f32.gmra.mxu3 %vm372_vm2, %v532_v54  ;;  %v430_v54 = vld [vmem:[%s1350_s5 + $0x10] sm:$0xff] }
 0x443   :  { %714 = vmatpush.msrb.mxu0 %v430_v54 }
 0x444   :  { %v733_v59 = vpop.xlane.xlu0 %732 }
 0x445   :  { %v735_v60 = vsub.f32 %v1242_v42, %v733_v59  ;;  %v429_v42 = vld [vmem:[%s1350_s5 + $0x8] sm:$0xff] }
 0x446   :  { %589 = vmatpush.msra.mxu1 %v429_v42 }
 0x447   :  { %v1286_v40 = vpop.eup %970  ;;  %v738_v1 = vmul.f32 1.442695, %v735_v60 }
 0x448   :  { %v642_v50 = vsel %vm372_vm2, %v1286_v40, 0.0 }
 0x449   :  { %643 = vadd.xlane.f32.xlu1 %v642_v50  ;;  %646 = vadd.xlane.f32.xlu0 %v645_v47 }
 0x457   :  { %v941_v61 = vpop.permute.xlu0 %940 }
 0x458   :  { %v942_v62 = vunpack.i.l.bf16 %v941_v61  ;;  %v943_v63 = vunpack.i.h.bf16 %v941_v61 }
 0x45a   :  { %492 = vmatpush.msrb.mxu2 %v942_v62 }
 0x45c   :  { %493 = vmatpush.msrb.mxu2 %v943_v63 }
 0x45d   :  { %950 = vrot.lane.b32.xlu0 %v1258_v14, %s1050_s14 }
 0x45e   :  { %618 = vmatpush.msra.mxu2 %v428_v53 }
 0x45f   :  { %v730_v55 = vpop.xlane.xlu1 %729 }
 0x460   :  { %v734_v0 = vsub.f32 %v1245_v58, %v730_v55 }
 0x462   :  { %v736_v57 = vmul.f32 1.442695, %v734_v0 }
 0x464   :  { %972 = vpow2.f32 %v736_v57 }
 0x465   :  { %974 = vpow2.f32 %v738_v1 }
 0x46a   :  { %v1295_v2 = vpop.eup %972 }
 0x46b   :  { %v740_v3 = vsel %vm372_vm2, %v1295_v2, 0.0  ;;  %v1299_v4 = vpop.eup %974 }
 0x46c   :  { %741 = vadd.xlane.f32.xlu1 %v740_v3  ;;  %v743_v5 = vsel %vm372_vm2, %v1299_v4, 0.0  ;;  %v955_v3 = vld [vmem:[%s1351_s6] ss:$0 sm:$0xff] }
 0x474   :  { %744 = vadd.xlane.f32.xlu1 %v743_v5 }
 0x477   :  { %v946_v6 = vpop.permute.xlu1 %945 }
 0x478   :  { %v947_v58 = vunpack.i.l.bf16 %v946_v6  ;;  %v948_v7 = vunpack.i.h.bf16 %v946_v6 }
 0x47a   :  { %684 = vmatpush.msra.mxu3 %v947_v58 }
 0x47c   :  { %685 = vmatpush.msra.mxu3 %v948_v7 }
 0x47e   :  { %909 = vmatpush.msrb.mxu3 %v430_v54 }
 0x4ac   :  { %v450_v8 = vpop.xlane.xlu0 %449 }
 0x4ad   :  { %976 = vrcp.f32 %v450_v8 }
 0x4b3   :  { %v977_v9 = vpop.eup %976 }
 0x4b4   :  { %v456_v10 = vmul.f32 %v977_v9, %v450_v8  ;;  %v453_v11 = vpop.xlane.xlu0 %452 }
 0x4b5   :  { %978 = vrcp.f32 %v453_v11 }
 0x4b6   :  { %v458_v12 = vsub.f32 2.0, %v456_v10 }
 0x4b8   :  { %v460_v13 = vmul.f32 %v977_v9, %v458_v12 }
 0x4ba   :  { %v462_v14 = vmul.f32 %v1275_v36, %v460_v13 }
 0x4bb   :  { %v979_v15 = vpop.eup %978 }
 0x4bc   :  { %v457_v16 = vmul.f32 %v979_v15, %v453_v11  ;;  %893 = vmatmul.msk.f32.vlgmr.msrb.gmra.mxu2 %vm372_vm2, %v462_v14  ;;  %v644_v17 = vpop.xlane.xlu1 %643  ;;  %v647_v18 = vpop.xlane.xlu0 %646 }
 0x4bd   :  { %980 = vrcp.f32 %v644_v17  ;;  %v562_v19 = vpop.f32.mrf.mxu3 }
 0x4be   :  { %v459_v20 = vsub.f32 2.0, %v457_v16  ;;  %982 = vrcp.f32 %v647_v18  ;;  %897 = vmatmul.msk.f32.vlgmr.msra.gmra.mxu1 %vm213_vm1, %v562_v19 }
 0x4c0   :  { %v461_v21 = vmul.f32 %v979_v15, %v459_v20 }
 0x4c2   :  { %v463_v22 = vmul.f32 %v967_v52, %v461_v21 }
 0x4c3   :  { %v981_v23 = vpop.eup %980 }
 0x4c4   :  { %v983_v24 = vpop.eup %982  ;;  %v650_v25 = vmul.f32 %v981_v23, %v644_v17  ;;  %894 = vmatmul.msk.f32.gmra.mxu2 %vm372_vm2, %v463_v22 }
 0x4c5   :  { %v565_v26 = vpop.f32.mrf.mxu3  ;;  %v651_v28 = vmul.f32 %v983_v24, %v647_v18 }
 0x4c6   :  { %v652_v27 = vsub.f32 2.0, %v650_v25  ;;  %898 = vmatmul.msk.f32.gmra.mxu1 %vm213_vm1, %v565_v26 }
 0x4c7   :  { %v653_v31 = vsub.f32 2.0, %v651_v28 }
 0x4c8   :  { %v654_v29 = vmul.f32 %v981_v23, %v652_v27 }
 0x4c9   :  { %v655_v32 = vmul.f32 %v983_v24, %v653_v31 }
 0x4ca   :  { %v656_v30 = vmul.f32 %v1286_v40, %v654_v29 }
 0x4cb   :  { %v657_v36 = vmul.f32 %v1284_v56, %v655_v32  ;;  %v431_v56 = vld [vmem:[%s1350_s5 + $0x18] sm:$0xff]  ;;  %s1051_s5 = smov [#allocation4]  }
 0x4cc   :  { %901 = vmatmul.msk.f32.vlgmr.msra.gmra.mxu3 %vm372_vm2, %v656_v30  ;;  %812 = vmatpush.msrb.mxu2 %v431_v56  ;;  %s851_s22 = sshll.u32 %s1051_s5, 4  ;;  %s852_s22 = int_to_ptr.vmem [resolvable:$true] %s851_s22 }
 0x4cd   :  { %859 = dma.vmem_to_hbm [thread:$0]  %s852_s22, 256, %s854_s2, [#allocation5], %s1052_s25, %s1052_s25, %s1053_s26  }
 0x4cf   :  { %v951_v33 = vpop.permute.xlu0 %950 }
 0x4d0   :  { %v952_v34 = vunpack.i.l.bf16 %v951_v33  ;;  %v953_v35 = vunpack.i.h.bf16 %v951_v33 }
 0x4d2   :  { %782 = vmatpush.msrb.mxu1 %v952_v34 }
 0x4d4   :  { %902 = vmatmul.msk.f32.gmra.mxu3 %vm372_vm2, %v657_v36  ;;  %783 = vmatpush.msrb.mxu1 %v953_v35 }
 0x4df   :  { %v742_v37 = vpop.xlane.xlu1 %741 }
 0x4e0   :  { %984 = vrcp.f32 %v742_v37 }
 0x4e6   :  { %v985_v38 = vpop.eup %984 }
 0x4e7   :  { %v748_v39 = vmul.f32 %v985_v38, %v742_v37  ;;  %v745_v41 = vpop.xlane.xlu1 %744 }
 0x4e8   :  { %986 = vrcp.f32 %v745_v41 }
 0x4e9   :  { %v750_v43 = vsub.f32 2.0, %v748_v39 }
 0x4eb   :  { %v752_v44 = vmul.f32 %v985_v38, %v750_v43 }
 0x4ed   :  { %v754_v46 = vmul.f32 %v1295_v2, %v752_v44 }
 0x4ee   :  { %v987_v48 = vpop.eup %986 }
 0x4ef   :  { %v749_v49 = vmul.f32 %v987_v48, %v745_v41  ;;  %905 = vmatmul.msk.f32.vlgmr.msrb.gmra.mxu1 %vm372_vm2, %v754_v46 }
 0x4f1   :  { %v751_v51 = vsub.f32 2.0, %v749_v49 }
 0x4f3   :  { %v753_v52 = vmul.f32 %v987_v48, %v751_v51 }
 0x4f5   :  { %v755_v45 = vmul.f32 %v1299_v4, %v753_v52 }
 0x4f7   :  { %906 = vmatmul.msk.f32.gmra.mxu1 %vm372_vm2, %v755_v45 }
 0x53b   :  { %v591_v61 = vpop.f32.mrf.mxu1 }
 0x53f   :  { %v495_v40 = vpop.f32.mrf.mxu2 }
 0x540   :  { %899 = vmatmul.msk.f32.vlgmr.msra.gmra.mxu2 %vm213_vm1, %v495_v40 }
 0x543   :  { %v594_v62 = vpop.f32.mrf.mxu1 }
 0x547   :  { %v498_v50 = vpop.f32.mrf.mxu2 }
 0x548   :  { %900 = vmatmul.msk.f32.gmra.mxu2 %vm213_vm1, %v498_v50 }
 0x54f   :  { %v687_v47 = vpop.f32.mrf.mxu3 }
 0x550   :  { %903 = vmatmul.msk.f32.vlgmr.msrb.gmra.mxu0 %vm213_vm1, %v687_v47 }
 0x557   :  { %v690_v59 = vpop.f32.mrf.mxu3 }
 0x558   :  { %904 = vmatmul.msk.f32.vlgmr.msrb.gmra.mxu3 %vm213_vm1, %v690_v59 }
 0x56c   :  { %v785_v63 = vpop.f32.mrf.mxu1 }
 0x56d   :  { %907 = vmatmul.msk.f32.vlgmr.msrb.gmra.mxu2 %vm213_vm1, %v785_v63 }
 0x574   :  { %v788_v55 = vpop.f32.mrf.mxu1 }
 0x575   :  { %908 = vmatmul.msk.f32.gmra.mxu2 %vm213_vm1, %v788_v55 }
 0x5c3   :  { %v620_v0 = vpop.f32.mrf.mxu2 }
 0x5c4   :  { %v621_v1 = vadd.f32 %v620_v0, %v591_v61 }
 0x5cb   :  { %v623_v60 = vpop.f32.mrf.mxu2 }
 0x5cc   :  { %v624_v7 = vadd.f32 %v623_v60, %v594_v62 }
 0x5cd   :  { %v716_v57 = vpop.f32.mrf.mxu0 }
 0x5ce   :  { %v722_v2 = vadd.f32 %v716_v57, %v621_v1 }
 0x5db   :  { %v719_v58 = vpop.f32.mrf.mxu3 }
 0x5dc   :  { %v723_v42 = vadd.f32 %v719_v58, %v624_v7 }
 0x5f0   :  { %v814_v4 = vpop.f32.mrf.mxu2 }
 0x5f1   :  { %v820_v5 = vadd.f32 %v814_v4, %v722_v2 }
 0x5f3   :  { %v826_v6 = vadd.f32 %v955_v3, %v820_v5 }
 0x5f5   :  { %828 = vst.msk [vmem:[#allocation2] sm:$0xff] %vm149_vm0, %v826_v6 }
 0x5f8   :  { %v817_v8 = vpop.f32.mrf.mxu2 }
 0x5f9   :  { %v821_v9 = vadd.f32 %v817_v8, %v723_v42 }
 0x5fb   :  { %v827_v10 = vadd.f32 %v955_v3, %v821_v9 }
 0x5fd   :  { %829 = vst.msk [vmem:[#allocation2 + $0x8] sm:$0xff] %vm149_vm0, %v827_v10 }
 0x5fe   :  { %846 = dma.vmem_to_hbm [thread:$0]  %s839_s29, 256, %s841_s11, [#allocation3], %s1052_s25, %s1052_s25, %s1053_s26  }
 0x5ff   :  { %1036 = dma.done.wait [#allocation3], 256  }
 0x600   :  { %1037 = vsyncadd [#allocation3], 4294967040 }
 0x601   :  { %1038 = dma.done.wait [#allocation5], 256  }
 0x602   :  { %1039 = vsyncadd [#allocation5], 4294967040 }
 0x603   :  { %868 = vsyncpa [#allocation3], 1 }
 0x604   :  { %869 = vsyncpa [#allocation5], 1 }

</bundles_post_ra>
